<compile_context>
chip_gen: v7x
topology: tpu7x:2x2x1
jax: 0.10.0
libtpu: 0.0.40
codegen_flags: <defaults>
</compile_context>

<pallas_src>
import jax
import jax.numpy as jnp
from jax.experimental import pallas as pl
from jax.experimental.pallas import tpu as pltpu


def depthnet_kernel(cost_ref, dvals_ref, prob_ref, stats_ref):
    # cost_ref / dvals_ref / prob_ref: (D, T);  stats_ref: (2, T)
    x = cost_ref[...].astype(jnp.float32)                      # (D, T)

    # softmax over the depth axis (sublanes) == exp(log_softmax(x, dim=1))
    m = jnp.max(x, axis=0, keepdims=True)                      # (1, T)
    e = jnp.exp(x - m)                                         # (D, T)
    s = jnp.sum(e, axis=0, keepdims=True)                      # (1, T)
    inv_s = pl.reciprocal(s)                                   # exact (1e-5 parity)
    prob_ref[...] = (e * inv_s).astype(prob_ref.dtype)

    # winner-take-all: argmax on raw cost (softmax is strictly monotone, so
    # indices / first-max tie-breaking match torch.max on prob).
    idx = jnp.argmax(x, axis=0, keepdims=True)                 # (1, T) int32
    d_iota = jax.lax.broadcasted_iota(jnp.int32, x.shape, 0)   # (D, T)
    sel = d_iota == idx
    dvals = dvals_ref[...].astype(jnp.float32)                 # (D, T)
    depth = jnp.sum(jnp.where(sel, dvals, 0.0), axis=0, keepdims=True)  # (1, T)

    # photometric confidence = max(prob) over depth = exp(0) / s = 1/s
    stats_ref[0:1, :] = depth.astype(stats_ref.dtype)
    stats_ref[1:2, :] = inv_s.astype(stats_ref.dtype)


def _vmem_caps():
    """(tile budget, scoped vmem limit), derived from the chip's VMEM size."""
    try:
        cap = pltpu.get_tpu_info().vmem_capacity_bytes
    except Exception:
        cap = 64 << 20  # conservative fallback (v7x per-TensorCore)
    limit = min(int(cap * 0.75), 96 << 20)
    budget = min(int(cap * 0.55), 64 << 20)
    return budget, limit


def _pick_tile(D, HW, B, budget, lane_cap=65536):
    """Largest lane tile (multiple of 128) such that the full per-step VMEM
    footprint (double-buffered pipelined blocks + in-kernel f32 temporaries)
    fits the budget, while keeping >= 2 total grid steps for v7x megacore."""
    # per-lane bytes: 2 buffers x (cost + dvals + prob = 3*D rows + 2 stats rows)
    # f32, plus ~7 D-row f32 temporaries (x, e, prob, sel, iota, dvals_f32, slack)
    per_lane = (2 * (3 * D + 2) + 7 * D) * 4
    t_budget = max(128, (budget // per_lane) // 128 * 128)
    hw128 = pl.cdiv(HW, 128) * 128
    t = min(lane_cap, hw128, t_budget)
    t = max(128, t - (t % 128))
    # keep at least 2 parallel grid steps so both v7x TensorCores get work
    while t > 128 and B * pl.cdiv(hw128, t) < 2:
        t = max(128, ((t // 2) // 128) * 128)
    return t


def depthnet_forward(cost_reg, depth_values, num_depth, interval):
    """Non-iterative branch of DepthNet.forward (_iter=False).

    cost_reg:     [B, 1, D, H, W] float32
    depth_values: [B, D, H, W]    float32 (per-pixel depth hypotheses)
    """
    B, C, D, H, W = cost_reg.shape
    assert C == 1 and D == num_depth
    HW = H * W

    budget, vmem_limit = _vmem_caps()
    TILE = _pick_tile(D, HW, B, budget)
    HW_pad = pl.cdiv(HW, TILE) * TILE

    cost = cost_reg.reshape(B, D, HW)
    dvals = depth_values.reshape(B, D, HW)
    if HW_pad != HW:
        pad = ((0, 0), (0, 0), (0, HW_pad - HW))
        cost = jnp.pad(cost, pad)    # softmax of zero pad is benign; sliced off
        dvals = jnp.pad(dvals, pad)

    grid = (B, HW_pad // TILE)

    prob, stats = pl.pallas_call(
        depthnet_kernel,
        out_shape=(
            jax.ShapeDtypeStruct((B, D, HW_pad), jnp.float32),   # prob_volume
            jax.ShapeDtypeStruct((B, 2, HW_pad), jnp.float32),   # [depth, conf]
        ),
        grid_spec=pltpu.PrefetchScalarGridSpec(
            num_scalar_prefetch=0,
            grid=grid,
            in_specs=[
                pl.BlockSpec((None, D, TILE), lambda b, j: (b, 0, j)),
                pl.BlockSpec((None, D, TILE), lambda b, j: (b, 0, j)),
            ],
            out_specs=[
                pl.BlockSpec((None, D, TILE), lambda b, j: (b, 0, j)),
                pl.BlockSpec((None, 2, TILE), lambda b, j: (b, 0, j)),
            ],
        ),
        compiler_params=pltpu.CompilerParams(
            dimension_semantics=("parallel", "parallel"),
            vmem_limit_bytes=vmem_limit,
        ),
    )(cost, dvals)

    if HW_pad != HW:
        prob = prob[:, :, :HW]
        stats = stats[:, :, :HW]

    return {
        "depth": stats[:, 0].reshape(B, H, W),
        "photometric_confidence": stats[:, 1].reshape(B, H, W),
        "prob_volume": prob.reshape(B, D, H, W),
        "depth_values": depth_values,
        "interval": interval,
    }
    # TODO(synk): the _iter=True branch (repeat over batch, cross-batch max +
    # gather) is a cold path in the reference code and is not implemented.


def _reference(cost_reg, depth_values):
    # pure-JAX reference mirroring the PyTorch semantics
    pv_pre = jnp.squeeze(cost_reg, axis=1)                      # [B, D, H, W]
    prob = jax.nn.softmax(pv_pre, axis=1)
    idx = jnp.argmax(prob, axis=1, keepdims=True)               # [B, 1, H, W]
    depth = jnp.take_along_axis(depth_values, idx, axis=1)[:, 0]
    conf = jnp.max(prob, axis=1)
    return prob, depth, conf


if __name__ == "__main__":
    key = jax.random.PRNGKey(0)
    B, D, H, W = 2, 8, 16, 16
    num_depth = D
    interval = jnp.float32(2.5)

    k1, k2 = jax.random.split(key)
    cost_reg = jax.random.normal(k1, (B, 1, D, H, W), dtype=jnp.float32)
    # monotone per-pixel depth hypotheses: base + d * interval (deterministic)
    base = 425.0 + 10.0 * jax.random.uniform(k2, (B, 1, H, W), dtype=jnp.float32)
    depth_values = base + interval * jnp.arange(D, dtype=jnp.float32).reshape(1, D, 1, 1)

    out = depthnet_forward(cost_reg, depth_values, num_depth, interval)
    jax.block_until_ready(out["depth"])
    jax.block_until_ready(out["prob_volume"])
    jax.block_until_ready(out["photometric_confidence"])

    # sanity check against pure-JAX reference
    prob_ref, depth_ref, conf_ref = _reference(cost_reg, depth_values)
    assert jnp.allclose(out["prob_volume"], prob_ref, atol=1e-5)
    assert jnp.allclose(out["depth"], depth_ref, atol=1e-4)
    assert jnp.allclose(out["photometric_confidence"], conf_ref, atol=1e-5)

    print("KERNEL_OK")
</pallas_src>

<mosaic_0001>
module attributes {stable_mosaic.version = 11 : i64} {
  func.func @depthnet_kernel(%arg0: i32, %arg1: i32, %arg2: memref<1x8x256xf32, #tpu.memory_space<vmem>>, %arg3: memref<1x8x256xf32, #tpu.memory_space<vmem>>, %arg4: memref<1x8x256xf32, #tpu.memory_space<vmem>>, %arg5: memref<1x2x256xf32, #tpu.memory_space<vmem>>) attributes {dimension_semantics = [#tpu.dimension_semantics<parallel>, #tpu.dimension_semantics<parallel>], iteration_bounds = array<i64: 2, 1>, scalar_prefetch = 0 : i64, scratch_operands = 0 : i64, tpu.core_type = #tpu.core_type<tc>, window_params = [{transform_indices = @transform_0, window_bounds = array<i64: 1, 8, 256>}, {transform_indices = @transform_1, window_bounds = array<i64: 1, 8, 256>}, {transform_indices = @transform_2, window_bounds = array<i64: 1, 8, 256>}, {transform_indices = @transform_3, window_bounds = array<i64: 1, 2, 256>}]} {
    %c0 = arith.constant 0 : index
    %c0_0 = arith.constant 0 : index
    %c0_1 = arith.constant 0 : index
    %0 = vector.load %arg2[%c0, %c0_0, %c0_1] : memref<1x8x256xf32, #tpu.memory_space<vmem>>, vector<1x8x256xf32>
    %1 = vector.shape_cast %0 : vector<1x8x256xf32> to vector<8x256xf32>
    %cst = arith.constant dense<0xFF800000> : vector<256xf32>
    %2 = vector.multi_reduction <maximumf>, %1, %cst [0] : vector<8x256xf32> to vector<256xf32>
    %3 = vector.shape_cast %2 : vector<256xf32> to vector<1x256xf32>
    %4 = vector.broadcast %3 : vector<1x256xf32> to vector<8x256xf32>
    %5 = arith.subf %1, %4 : vector<8x256xf32>
    %6 = math.exp %5 : vector<8x256xf32>
    %cst_2 = arith.constant dense<0.000000e+00> : vector<256xf32>
    %7 = vector.multi_reduction <add>, %6, %cst_2 [0] : vector<8x256xf32> to vector<256xf32>
    %8 = vector.shape_cast %7 : vector<256xf32> to vector<1x256xf32>
    %9 = tpu.reciprocal %8 : vector<1x256xf32> -> vector<1x256xf32>
    %10 = vector.broadcast %9 : vector<1x256xf32> to vector<8x256xf32>
    %11 = arith.mulf %6, %10 : vector<8x256xf32>
    %c0_3 = arith.constant 0 : index
    %c0_4 = arith.constant 0 : index
    %c0_5 = arith.constant 0 : index
    %12 = vector.load %arg4[%c0_3, %c0_4, %c0_5] : memref<1x8x256xf32, #tpu.memory_space<vmem>>, vector<1x8x256xf32>
    %13 = vector.shape_cast %12 : vector<1x8x256xf32> to vector<8x256xf32>
    %14 = vector.shape_cast %11 : vector<8x256xf32> to vector<1x8x256xf32>
    tpu.vector_store %arg4[%c0_3, %c0_4, %c0_5], %14 {strides = array<i32>} : memref<1x8x256xf32, #tpu.memory_space<vmem>>, vector<1x8x256xf32>,
    %15 = tpu.reduce_index %1 {axis = 0 : i32, kind = #tpu.reduction_kind<arg_max>} : vector<8x256xf32> -> vector<256xi32>
    %16 = vector.shape_cast %15 : vector<256xi32> to vector<1x256xi32>
    %17 = tpu.iota {dimensions = array<i32: 0>} : vector<8x256xi32>
    %18 = vector.broadcast %16 : vector<1x256xi32> to vector<8x256xi32>
    %19 = arith.cmpi eq, %17, %18 : vector<8x256xi32>
    %c0_6 = arith.constant 0 : index
    %c0_7 = arith.constant 0 : index
    %c0_8 = arith.constant 0 : index
    %20 = vector.load %arg3[%c0_6, %c0_7, %c0_8] : memref<1x8x256xf32, #tpu.memory_space<vmem>>, vector<1x8x256xf32>
    %21 = vector.shape_cast %20 : vector<1x8x256xf32> to vector<8x256xf32>
    %cst_9 = arith.constant 0.000000e+00 : f32
    %22 = vector.broadcast %cst_9 : f32 to vector<8x256xf32>
    %23 = arith.select %19, %21, %22 : vector<8x256xi1>, vector<8x256xf32>
    %cst_10 = arith.constant dense<0.000000e+00> : vector<256xf32>
    %24 = vector.multi_reduction <add>, %23, %cst_10 [0] : vector<8x256xf32> to vector<256xf32>
    %25 = vector.shape_cast %24 : vector<256xf32> to vector<1x256xf32>
    %c0_11 = arith.constant 0 : index
    %c0_12 = arith.constant 0 : index
    %c0_13 = arith.constant 0 : index
    %26 = vector.load %arg5[%c0_11, %c0_12, %c0_13] : memref<1x2x256xf32, #tpu.memory_space<vmem>>, vector<1x1x256xf32>
    %27 = vector.shape_cast %26 : vector<1x1x256xf32> to vector<1x256xf32>
    %28 = vector.shape_cast %25 : vector<1x256xf32> to vector<1x1x256xf32>
    tpu.vector_store %arg5[%c0_11, %c0_12, %c0_13], %28 {strides = array<i32>} : memref<1x2x256xf32, #tpu.memory_space<vmem>>, vector<1x1x256xf32>,
    %c0_14 = arith.constant 0 : index
    %c1 = arith.constant 1 : index
    %c0_15 = arith.constant 0 : index
    %29 = vector.load %arg5[%c0_14, %c1, %c0_15] : memref<1x2x256xf32, #tpu.memory_space<vmem>>, vector<1x1x256xf32>
    %30 = vector.shape_cast %29 : vector<1x1x256xf32> to vector<1x256xf32>
    %31 = vector.shape_cast %9 : vector<1x256xf32> to vector<1x1x256xf32>
    tpu.vector_store %arg5[%c0_14, %c1, %c0_15], %31 {strides = array<i32>} : memref<1x2x256xf32, #tpu.memory_space<vmem>>, vector<1x1x256xf32>,
    return
  }
  func.func @transform_0(%arg0: i32, %arg1: i32) -> (i32, i32, i32) {
    %c0_i32 = arith.constant 0 : i32
    %c0_i32_0 = arith.constant 0 : i32
    return %arg0, %c0_i32, %arg1 : i32, i32, i32
  }
  func.func @transform_1(%arg0: i32, %arg1: i32) -> (i32, i32, i32) {
    %c0_i32 = arith.constant 0 : i32
    %c0_i32_0 = arith.constant 0 : i32
    return %arg0, %c0_i32, %arg1 : i32, i32, i32
  }
  func.func @transform_2(%arg0: i32, %arg1: i32) -> (i32, i32, i32) {
    %c0_i32 = arith.constant 0 : i32
    %c0_i32_0 = arith.constant 0 : i32
    return %arg0, %c0_i32, %arg1 : i32, i32, i32
  }
  func.func @transform_3(%arg0: i32, %arg1: i32) -> (i32, i32, i32) {
    %c0_i32 = arith.constant 0 : i32
    %c0_i32_0 = arith.constant 0 : i32
    return %arg0, %c0_i32, %arg1 : i32, i32, i32
  }
}

</mosaic_0001>

<bundles_post_ra>
// kernel: tpu_custom_call.1
= control target key start
LH: loop header
LB: loop body
LE: loop exit
PB: predicated region body
PF: predicated region fallthrough
CT: control target
= control target key end

     0   :  { %9 = vsyncpa [#allocation3], 0  ;;  %s1189_s0 = inlined_call_operand.hbm [shape: f32[2,8,256], index: 0, kind: input, shape index: {}]   ;;  %s1190_s1 = inlined_call_operand.hbm [shape: f32[2,8,256], index: 1, kind: input, shape index: {}]   ;;  %s1191_s2 = inlined_call_operand.hbm [shape: f32[2,8,256], index: 2, kind: output, shape index: {0}]   ;;  %s1192_s3 = inlined_call_operand.hbm [shape: f32[2,2,256], index: 3, kind: output, shape index: {1}]  }
   0x1   :  { %11 = vsyncpa [#allocation3 + $0x1], 0 }
   0x2   :  { %12 = vsyncpa [#allocation6], 0 }
   0x3   :  { %14 = vsyncpa [#allocation6 + $0x1], 0 }
   0x4   :  { %15 = vsyncpa [#allocation4], 0 }
   0x5   :  { %17 = vsyncpa [#allocation4 + $0x1], 0 }
   0x6   :  { %18 = vsyncpa [#allocation9], 0 }
   0x7   :  { %20 = vsyncpa [#allocation9 + $0x1], 0  ;;  %s897_s12 = smov 0   ;;  %s899_s13 = smov 0  }
   0x8   :  { %s901_s14 = smov 0   ;;  %s903_s15 = smov 0  }
   0x9   :  { %s905_s16 = smov 0   ;;  %s907_s17 = smov 0  }
   0xa LB: > { %s583_s18 = sadd.s32 4294967295, %s870_s17   ;;  %s584_s19 = sadd.s32 4294967294, %s870_s17   ;;  %s870_s17 = sphi %s907_s17, %s26_s17   ;;  %s866_s16 = sphi %s905_s16, %s1214_s16   ;;  %s862_s15 = sphi %s903_s15, %s1213_s15   ;;  %s858_s14 = sphi %s901_s14, %s1212_s14   ;;  %s854_s13 = sphi %s899_s13, %s1211_s13   ;;  %s850_s12 = sphi %s897_s12, %s1210_s12  }
   0xb   : > { %s38_s20 = sadd.s32 1, %s866_s16  ;;  %s47_s21 = sadd.s32 1, %s858_s14 }
   0xc   : > { %p40_p0 = scmp.ge.s32.totalorder %s38_s20, 2  ;;  %p54_p1 = scmp.ne.s32.totalorder %s858_s14, %s854_s13 }
   0xd   : > { %p55_p2 = scmp.eq.s32.totalorder %s870_s17, 0  ;;  %p60_p3 = scmp.ne.s32.totalorder %s854_s13, %s850_s12 }
   0xe   : > { %s1216_s20 = smov (%p40_p0, %s38_s20), 0  ;;  %p61_p5 = scmp.eq.s32.totalorder %s583_s18, 0 }
   0xf   : > { %p938_p4 = por %p55_p2, %p54_p1  ;;  %s42_s23 = ssub.s32 %s866_s16, %s1216_s20 }
  0x10   : > { %p114_p6 = scmp.eq.s32.totalorder %s583_s18, 1  ;;  %p45_p7 = scmp.eq.s32.totalorder %s42_s23, 0 }
  0x11   : > { %p944_p8 = por %p61_p5, %p60_p3  ;;  %p120_p10 = scmp.eq.s32.totalorder %s584_s19, 1 }
  0x12   : > { %p948_p9 = por %p114_p6, %p54_p1  ;;  %p633_p13 = scmp.lt.s32.totalorder %s870_s17, 2 }
  0x13   : > { %s1196_s24 = scalar_select %p944_p8, 1, 0 }
  0x14   : > { %s1197_s25 = scalar_select %p948_p9, 1, 0 }
  0x15   : > { %s953_s26 = scalar_select %p45_p7, %s858_s14, %s47_s21  }
  0x16   : > { %p955_p11 = por %p120_p10, %p60_p3  ;;  %s962_s28 = sand.u32 1, %s858_s14  }
  0x17   : > { %s587_s29 = sshll.u32 %s962_s28, 4  ;;  %s607_s30 = sshll.u32 %s866_s16, 8 }
  0x18   : > { %s1198_s27 = scalar_select %p955_p11, 1, 0 }
  0x19   : > { %s971_s6 = scalar_lea.hbm %s1189_s0, %s607_s30  ;;  %s172_s7 = scalar_lea.vmem [#allocation2], %s587_s29 }
  0x1a   : > { %s182_s8 = sshll.u32 %s172_s7, 4  ;;  %p979_p0 = pnand %p633_p13, %p938_p4  ;;  %s975_s8 = int_to_ptr.vmem [resolvable:$true] %s182_s8 }
  0x1b   : > { %s169_s10 = scalar_lea.sflag [#allocation3], %s962_s28  ;;  %s692_s11 = scalar_lea.hbm %s971_s6, 256 }
  0x1c   : > { %p693_p3 = scmp.ne.s32.totalorder %s971_s6, %s692_s11  ;;  %p694_p5 = pneg %p979_p0 }
  0x1d   : > { %s697_s21 = scalar_lea.hbm %s1189_s0, 512  ;;  %p698_p4 = scmp.lt.u32.totalorder %s971_s6, %s1189_s0 }
  0x1e   : > { %p695_p6 = pnand %p694_p5, %p693_p3  ;;  %p699_p10 = scmp.lt.u32.totalorder %s697_s21, %s692_s11 }
  0x1f   : > { %p701_p12 = scmp.lt.u32.totalorder %s692_s11, %s971_s6 }
  0x20   : > { %p696_p7 = pneg %p695_p6  ;;  %p700_p13 = por %p699_p10, %p698_p4 }
  0x22   : > { %p702_p1 = por %p701_p12, %p700_p13 }
  0x24   : > { %p703_p2 = pnand %p702_p1, %p696_p7 }
  0x26   : > { %706 = shalt.err (!%p703_p2)
}
  0x27   : > { %s707_s4 = scalar_lea.vmem %s975_s8, 256  ;;  %s872_s5 = smov [#allocation2]  }
  0x28   : > { %p708_p3 = scmp.ne.s32.totalorder %s975_s8, %s707_s4  ;;  %s712_s7 = sshll.u32 %s872_s5, 4  ;;  %s713_s7 = int_to_ptr.vmem [resolvable:$false] %s712_s7 }
  0x29   : > { %s714_s18 = scalar_lea.vmem %s713_s7, 512  ;;  %p715_p9 = scmp.lt.s32.totalorder %s975_s8, %s713_s7 }
  0x2a   : > { %p710_p6 = pnand %p708_p3, %p694_p5  ;;  %p716_p4 = scmp.lt.s32.totalorder %s714_s18, %s707_s4 }
  0x2c   : > { %p711_p11 = pneg %p710_p6  ;;  %p717_p10 = por %p716_p4, %p715_p9 }
  0x2e   : > { %p718_p12 = pnand %p717_p10, %p711_p11 }
  0x30   : > { %721 = shalt.err (!%p718_p12)
}
  0x31   : > { %622 = dma.hbm_to_vmem [thread:$0]  (!%p979_p0), %s971_s6, 256, %s975_s8, %s169_s10  }
  0x32   : > { %p1200_p1 = scmp.lt.s32.totalorder %s870_s17, 3  ;;  %p1201_p2 = scmp.ge.s32.totalorder %s870_s17, 1 }
  0x33   : > { %s1024_s22 = scalar_lea.hbm %s1190_s1, %s607_s30  ;;  %s193_s23 = scalar_lea.vmem [#allocation5], %s587_s29 }
  0x34   : > { %p1015_p7 = pnand %p1201_p2, %p1200_p1  ;;  %s203_s4 = sshll.u32 %s193_s23, 4  ;;  %s204_s4 = int_to_ptr.vmem [resolvable:$true] %s203_s4 }
  0x35   : > { %s190_s6 = scalar_lea.sflag [#allocation6], %s962_s28  ;;  %s722_s8 = scalar_lea.hbm %s1024_s22, 256 }
  0x36   : > { %s1202_s11 = scalar_select %p1015_p7, 1, 0 }
  0x37   : > { %p723_p9 = scmp.ne.s32.totalorder %s1024_s22, %s722_s8  ;;  %s727_s30 = scalar_lea.hbm %s1190_s1, 512 }
  0x38   : > { %p728_p3 = scmp.lt.u32.totalorder %s1024_s22, %s1190_s1  ;;  %p729_p6 = scmp.lt.u32.totalorder %s727_s30, %s722_s8 }
  0x39   : > { %p725_p11 = pnand %p723_p9, %p694_p5  ;;  %p731_p10 = scmp.lt.u32.totalorder %s722_s8, %s1024_s22 }
  0x3a   : > { %p730_p4 = por %p729_p6, %p728_p3 }
  0x3b   : > { %p726_p13 = pneg %p725_p11 }
  0x3c   : > { %p732_p12 = por %p731_p10, %p730_p4 }
  0x3e   : > { %p733_p1 = pnand %p732_p12, %p726_p13 }
  0x40   : > { %736 = shalt.err (!%p733_p1)
}
  0x41   : > { %s737_s28 = scalar_lea.vmem %s204_s4, 256  ;;  %s873_s29 = smov [#allocation5]  }
  0x42   : > { %p738_p2 = scmp.ne.s32.totalorder %s204_s4, %s737_s28  ;;  %s742_s19 = sshll.u32 %s873_s29, 4  ;;  %s743_s19 = int_to_ptr.vmem [resolvable:$false] %s742_s19 }
  0x43   : > { %s744_s21 = scalar_lea.vmem %s743_s19, 512  ;;  %p745_p8 = scmp.lt.s32.totalorder %s204_s4, %s743_s19 }
  0x44   : > { %p740_p9 = pnand %p738_p2, %p694_p5  ;;  %p746_p7 = scmp.lt.s32.totalorder %s744_s21, %s737_s28 }
  0x46   : > { %p741_p11 = pneg %p740_p9  ;;  %p747_p3 = por %p746_p7, %p745_p8 }
  0x48   : > { %p748_p6 = pnand %p747_p3, %p741_p11 }
  0x4a   : > { %751 = shalt.err (!%p748_p6)
}
  0x4b   : > { %625 = dma.hbm_to_vmem [thread:$0]  (!%p979_p0), %s1024_s22, 256, %s204_s4, %s190_s6  }
  0x4c   : > { %p1203_p13 = scmp.ne.s32.totalorder %s1202_s11, 0 }
  0x4d   : > { %s1051_s23 = sand.u32 (!%p1203_p13), 1, %s854_s13   ;;  %p1204_p8 = scmp.ne.s32.totalorder (!%p1203_p13), %s1196_s24, 0 }
  0x4e   : > { %212 = sbr.rel (%p1203_p13) target bundleno = 179 (0xb3), region = 28  ;;  %s1054_s8 = sshll.u32 (!%p1203_p13), %s1051_s23, 4 }
  0x4f   : > { %s215_s10 = scalar_lea.sflag (!%p1203_p13), [#allocation3], %s1051_s23  ;;  %s218_s5 = scalar_lea.vmem (!%p1203_p13), [#allocation2], %s1054_s8 }
  0x55   : > { %833 = dma.done.wait (%p1204_p8), %s215_s10, 256  }
  0x56   : > { %835 = vsyncadd (%p1204_p8), %s215_s10, 4294967040  ;;  %s224_s9 = scalar_lea.sflag [#allocation6], %s1051_s23  ;;  %s227_s11 = scalar_lea.vmem [#allocation5], %s1054_s8 }
  0x57   : > { %837 = dma.done.wait (%p1204_p8), %s224_s9, 256  }
  0x58   : > { %839 = vsyncadd (%p1204_p8), %s224_s9, 4294967040  ;;  %v302_v0 = vlaneseq  ;;  %v264_v2 = vld [vmem:[%s218_s5] sm:$0xff]  ;;  %v265_v3 = vld [vmem:[%s218_s5 + $0x8] sm:$0xff]  ;;  %v874_v51 = vmov 1966171168   ;;  %s597_s24 = sshll.u32 %s1051_s23, 2 }
  0x59   : > { %v266_v5 = vrot.slane %v264_v2, 4  ;;  %v272_v6 = vrot.slane %v265_v3, 4  ;;  %v341_v38 = vld [vmem:[%s227_s11] sm:$0xff]  ;;  %v342_v43 = vld [vmem:[%s227_s11 + $0x8] sm:$0xff]  ;;  %v361_v52 = vunpack.c.l.s4 %v874_v51  ;;  %s1092_s22 = scalar_lea.vmem [#allocation8], %s597_s24  ;;  %s252_s4 = scalar_lea.vmem [#allocation7], %s1054_s8 }
  0x5a   : > { %v1069_v1 = vshrl.u32 %v302_v0, 7  ;;  %vm1087_vm8 = vcmp.lt.s32.totalorder %v302_v0, 256  ;;  %s422_s6 = sshll.u32 %s252_s4, 4  ;;  %s609_s30 = sshll.u32 %s862_s15, 8  ;;  %s1099_s6 = int_to_ptr.vmem [resolvable:$true] %s422_s6 }
  0x5b   : > { %v267_v7 = vmax.f32 %v264_v2, %v266_v5  ;;  %v273_v8 = vmax.f32 %v265_v3, %v272_v6  ;;  %vm306_vm0 = vcmp.ge.f32.partialorder %v264_v2, %v266_v5  ;;  %vm319_vm1 = vcmp.ge.f32.partialorder %v265_v3, %v272_v6  ;;  %s438_s7 = sshll.u32 %s1092_s22, 4  ;;  %s1105_s29 = scalar_lea.hbm %s1191_s2, %s609_s30  ;;  %s1108_s7 = int_to_ptr.vmem [resolvable:$true] %s438_s7 }
  0x5c   : > { %v305_v4 = vrot.slane %v1069_v1, 4  ;;  %v307_v9 = vsel %vm306_vm0, %v264_v2, %v266_v5  ;;  %v320_v11 = vsel %vm319_vm1, %v265_v3, %v272_v6  ;;  %v333_v23 = vsub.s32 0, %v1069_v1  ;;  %s610_s19 = sshll.u32 %s862_s15, 6  ;;  %s401_s21 = scalar_lea.sflag [#allocation4], %s1051_s23 }
  0x5d   : > { %v268_v13 = vrot.slane %v267_v7, 2  ;;  %v274_v14 = vrot.slane %v273_v8, 2  ;;  %v309_v15 = vrot.slane %v307_v9, 6  ;;  %v322_v17 = vrot.slane %v320_v11, 6  ;;  %s752_s8 = scalar_lea.vmem %s1099_s6, 256  ;;  %p1207_p5 = scmp.ne.s32.totalorder %s1197_s25, 0 }
  0x5e   : > { %v308_v10 = vsel %vm306_vm0, %v1069_v1, %v305_v4  ;;  %v321_v12 = vsel %vm319_vm1, %v1069_v1, %v305_v4  ;;  %v362_v57 = vunpack.c.0.s8 %v361_v52  ;;  %p753_p0 = scmp.ne.s32.totalorder %s1099_s6, %s752_s8  ;;  %s875_s10 = smov [#allocation7]  }
  0x5f   : > { %v310_v16 = vrot.slane %v308_v10, 6  ;;  %v323_v18 = vrot.slane %v321_v12, 6  ;;  %v269_v19 = vmax.f32 %v267_v7, %v268_v13  ;;  %v275_v20 = vmax.f32 %v273_v8, %v274_v14  ;;  %s756_s5 = sshll.u32 %s875_s10, 4  ;;  %s757_s5 = int_to_ptr.vmem [resolvable:$false] %s756_s5 }
  0x60   : > { %vm311_vm2 = vcmp.ge.f32.partialorder %v307_v9, %v309_v15  ;;  %vm324_vm3 = vcmp.ge.f32.partialorder %v320_v11, %v322_v17  ;;  %p754_p7 = pnand %p753_p0, %p1207_p5  ;;  %s758_s9 = scalar_lea.vmem %s757_s5, 512 }
  0x61   : > { %v312_v21 = vsel %vm311_vm2, %v307_v9, %v309_v15  ;;  %v313_v22 = vsel %vm311_vm2, %v308_v10, %v310_v16  ;;  %v270_v24 = vrot.slane %v269_v19, 1  ;;  %v276_v25 = vrot.slane %v275_v20, 1  ;;  %p759_p10 = scmp.lt.s32.totalorder %s1099_s6, %s757_s5  ;;  %p760_p12 = scmp.lt.s32.totalorder %s758_s9, %s752_s8 }
  0x62   : > { %v314_v26 = vrot.slane %v312_v21, 7  ;;  %v315_v27 = vrot.slane %v313_v22, 7  ;;  %v325_v28 = vsel %vm324_vm3, %v320_v11, %v322_v17  ;;  %v326_v29 = vsel %vm324_vm3, %v321_v12, %v323_v18  ;;  %p755_p4 = pneg %p754_p7 }
  0x63   : > { %v271_v30 = vmax.f32 %v269_v19, %v270_v24  ;;  %v277_v31 = vmax.f32 %v275_v20, %v276_v25  ;;  %v327_v32 = vrot.slane %v325_v28, 7  ;;  %v328_v34 = vrot.slane %v326_v29, 7  ;;  %p761_p1 = por %p760_p12, %p759_p10 }
  0x64   : > { %vm316_vm4 = vcmp.ge.f32.partialorder %v312_v21, %v314_v26 }
  0x65   : > { %v317_v33 = vsel %vm316_vm4, %v313_v22, %v315_v27  ;;  %v278_v35 = vsub.f32 %v264_v2, %v271_v30  ;;  %v279_v36 = vsub.f32 %v265_v3, %v277_v31  ;;  %vm329_vm5 = vcmp.ge.f32.partialorder %v325_v28, %v327_v32  ;;  %p762_p2 = pnand %p761_p1, %p755_p4 }
  0x66   : > { %v334_v37 = vrot.slane %v317_v33, %v333_v23  ;;  %v330_v39 = vsel %vm329_vm5, %v326_v29, %v328_v34  ;;  %v1082_v3 = vsub.s32 %v362_v57, %v1069_v1 }
  0x67   : > { %v280_v40 = vmul.f32 1.442695, %v278_v35  ;;  %v282_v41 = vmul.f32 1.442695, %v279_v36  ;;  %v338_v42 = vrot.slane %v330_v39, %v333_v23 }
  0x68   : > { %vm339_vm6 = vcmp.eq.s32.totalorder %v1069_v1, %v334_v37 }
  0x69   : > { %v343_v44 = vsel %vm339_vm6, %v341_v38, 0.0  ;;  %684 = vpow2.f32 %v280_v40  ;;  %vm340_vm7 = vcmp.eq.s32.totalorder %v1069_v1, %v338_v42 }
  0x6a   : > { %v345_v45 = vrot.slane %v343_v44, 4  ;;  %686 = vpow2.f32 %v282_v41  ;;  %v344_v46 = vsel %vm340_vm7, %v342_v43, 0.0 }
  0x6b   : > { %v351_v48 = vrot.slane %v344_v46, 4 }
  0x6c   : > { %v346_v47 = vadd.f32 %v345_v45, %v343_v44 }
  0x6d   : > { %v352_v50 = vadd.f32 %v351_v48, %v344_v46 }
  0x6e   : > { %v347_v49 = vrot.slane %v346_v47, 2 }
  0x6f   : > { %v353_v54 = vrot.slane %v352_v50, 2 }
  0x70   : > { %v348_v53 = vadd.f32 %v347_v49, %v346_v47 }
  0x71   : > { %v354_v56 = vadd.f32 %v353_v54, %v352_v50 }
  0x72   : > { %v349_v55 = vrot.slane %v348_v53, 1 }
  0x73   : > { %v685_v58 = vpop.eup %684  ;;  %v355_v60 = vrot.slane %v354_v56, 1 }
  0x74   : > { %v350_v59 = vadd.f32 %v349_v55, %v348_v53  ;;  %v687_v61 = vpop.eup %686  ;;  %v284_v62 = vrot.slane %v685_v58, 4 }
  0x75   : > { %v290_v63 = vrot.slane %v687_v61, 4  ;;  %v356_v2 = vadd.f32 %v355_v60, %v354_v56 }
  0x76   : > { %v285_v4 = vadd.f32 %v685_v58, %v284_v62 }
  0x77   : > { %v291_v5 = vadd.f32 %v687_v61, %v290_v63  ;;  %v359_v6 = vcombine.low %v350_v59, %v356_v2 }
  0x78   : > { %v286_v7 = vrot.slane %v285_v4, 2 }
  0x79   : > { %v292_v8 = vrot.slane %v291_v5, 2  ;;  %v366_v9 = vrot.slane %v359_v6, %v1082_v3 }
  0x7a   : > { %v287_v10 = vadd.f32 %v286_v7, %v285_v4 }
  0x7b   : > { %v293_v12 = vadd.f32 %v292_v8, %v291_v5  ;;  %v373_v1 = vrot.slane %v366_v9, %v1082_v3 }
  0x7c   : > { %v288_v13 = vrot.slane %v287_v10, 1 }
  0x7d   : > { %v294_v14 = vrot.slane %v293_v12, 1  ;;  %379 = vst.msk [vmem:[%s1092_s22] ss:$2 sm:$0x3] %vm1087_vm8, %v373_v1 }
  0x7e   : > { %v289_v15 = vadd.f32 %v288_v13, %v287_v10 }
  0x7f   : > { %v295_v16 = vadd.f32 %v294_v14, %v293_v12 }
  0x80   : > { %688 = vrcp.f32 %v289_v15 }
  0x81   : > { %690 = vrcp.f32 %v295_v16 }
  0x8a   : > { %v689_v0 = vpop.eup %688 }
  0x8b   : > { %v691_v17 = vpop.eup %690  ;;  %v298_v18 = vmul.f32 %v689_v0, %v685_v58 }
  0x8c   : > { %v299_v19 = vmul.f32 %v691_v17, %v687_v61  ;;  %v382_v20 = vcombine.low %v689_v0, %v691_v17 }
  0x8d   : > { %300 = vst [vmem:[%s252_s4] sm:$0xff] %v298_v18 }
  0x8e   : > { %301 = vst [vmem:[%s252_s4 + $0x8] sm:$0xff] %v299_v19  ;;  %v389_v21 = vrot.slane %v382_v20, %v1082_v3 }
  0x8f   : > { %765 = shalt.err (!%p762_p2)
}
  0x90   : > { %s766_s11 = scalar_lea.hbm %s1105_s29, 256  ;;  %s770_s30 = scalar_lea.hbm %s1191_s2, 512 }
  0x91   : > { %p767_p9 = scmp.ne.s32.totalorder %s1105_s29, %s766_s11  ;;  %p771_p6 = scmp.lt.u32.totalorder %s1105_s29, %s1191_s2 }
  0x92   : > { %p772_p13 = scmp.lt.u32.totalorder %s770_s30, %s766_s11  ;;  %p774_p0 = scmp.lt.u32.totalorder %s766_s11, %s1105_s29 }
  0x93   : > { %p768_p11 = pnand %p767_p9, %p1207_p5 }
  0x94   : > { %p773_p8 = por %p772_p13, %p771_p6 }
  0x95   : > { %p769_p3 = pneg %p768_p11 }
  0x96   : > { %p775_p7 = por %p774_p0, %p773_p8 }
  0x98   : > { %p776_p4 = pnand %p775_p7, %p769_p3 }
  0x9a   : > { %779 = shalt.err (!%p776_p4)
}
  0x9b   : > { %615 = dma.vmem_to_hbm [thread:$0]  (%p1207_p5), %s1099_s6, 256, %s1105_s29, %s401_s21   ;;  %v396_v22 = vrot.slane %v389_v21, %v1082_v3 }
  0x9c   : > { %s1139_s5 = scalar_lea.hbm %s1192_s3, %s610_s19  ;;  %s406_s9 = scalar_lea.sflag [#allocation9], %s1051_s23 }
  0x9d   : > { %598 = vst.msk [vmem:[%s1092_s22 + $0x1] ss:$2 sm:$0x3] %vm1087_vm8, %v396_v22  ;;  %s780_s11 = scalar_lea.vmem %s1108_s7, 64  ;;  %s876_s24 = smov [#allocation8]  }
  0x9e   : > { %p781_p10 = scmp.ne.s32.totalorder %s1108_s7, %s780_s11  ;;  %s784_s4 = sshll.u32 %s876_s24, 4  ;;  %s785_s4 = int_to_ptr.vmem [resolvable:$false] %s784_s4 }
  0x9f   : > { %s786_s6 = scalar_lea.vmem %s785_s4, 128  ;;  %p787_p2 = scmp.lt.s32.totalorder %s1108_s7, %s785_s4 }
  0xa0   : > { %p782_p12 = pnand %p781_p10, %p1207_p5  ;;  %p788_p9 = scmp.lt.s32.totalorder %s786_s6, %s780_s11 }
  0xa2   : > { %p783_p1 = pneg %p782_p12  ;;  %p789_p11 = por %p788_p9, %p787_p2 }
  0xa4   : > { %p790_p3 = pnand %p789_p11, %p783_p1 }
  0xa6   : > { %793 = shalt.err (!%p790_p3)
}
  0xa7   : > { %s794_s15 = scalar_lea.hbm %s1139_s5, 64  ;;  %s798_s29 = scalar_lea.hbm %s1192_s3, 128 }
  0xa8   : > { %p795_p6 = scmp.ne.s32.totalorder %s1139_s5, %s794_s15  ;;  %p799_p0 = scmp.lt.u32.totalorder %s1139_s5, %s1192_s3 }
  0xa9   : > { %p800_p7 = scmp.lt.u32.totalorder %s798_s29, %s794_s15  ;;  %p802_p10 = scmp.lt.u32.totalorder %s794_s15, %s1139_s5 }
  0xaa   : > { %p796_p13 = pnand %p795_p6, %p1207_p5 }
  0xab   : > { %p801_p4 = por %p800_p7, %p799_p0 }
  0xac   : > { %p797_p8 = pneg %p796_p13 }
  0xad   : > { %p803_p12 = por %p802_p10, %p801_p4 }
  0xaf   : > { %p804_p1 = pnand %p803_p12, %p797_p8 }
  0xb1   : > { %807 = shalt.err (!%p804_p1)
}
  0xb2   : > { %616 = dma.vmem_to_hbm [thread:$0]  (%p1207_p5), %s1108_s7, 64, %s1139_s5, %s406_s9  }
  0xb3 PF: > { %s450_s30 = sand.u32 1, %s850_s12   ;;  %p1208_p2 = scmp.ne.s32.totalorder %s1198_s27, 0 }
  0xb4   : > { %p1209_p9 = scmp.ge.s32.totalorder %s870_s17, 2  ;;  %s451_s18 = scalar_lea.sflag [#allocation4], %s450_s30 }
  0xb6   : > { %p627_p11 = pnand %p1209_p9, %p1208_p2 }
  0xb8   : > { %841 = dma.done.wait (!%p627_p11), %s451_s18, 256  }
  0xb9   : > { %843 = vsyncadd (!%p627_p11), %s451_s18, 4294967040  ;;  %s460_s28 = scalar_lea.sflag [#allocation9], %s450_s30 }
  0xba   : > { %845 = dma.done.wait (!%p627_p11), %s460_s28, 64  }
  0xbb   : > { %847 = vsyncadd (!%p627_p11), %s460_s28, 4294967232  ;;  %s26_s17 = sadd.s32 1, %s870_s17   ;;  %s1210_s12 = smov %s854_s13 }
  0xbc   : > { %p23_p3 = scmp.ge.s32.totalorder %s26_s17, 4   ;;  %s1211_s13 = smov %s858_s14 }
  0xbd   : > { %s1212_s14 = smov %s953_s26  ;;  %s1213_s15 = smov %s866_s16 }
  0xbe   : > { %s1214_s16 = smov %s1216_s20  ;;  %25 = sbr.rel (!%p23_p3) target bundleno = 10 (0xa), region = 104 }
  0xc5   :  { %465 = vsyncpa [#allocation3], 1 }
  0xc6   :  { %467 = vsyncpa [#allocation3 + $0x1], 1 }
  0xc7   :  { %468 = vsyncpa [#allocation6], 1 }
  0xc8   :  { %470 = vsyncpa [#allocation6 + $0x1], 1 }
  0xc9   :  { %471 = vsyncpa [#allocation4], 1 }
  0xca   :  { %473 = vsyncpa [#allocation4 + $0x1], 1 }
  0xcb   :  { %474 = vsyncpa [#allocation9], 1 }
  0xcc   :  { %476 = vsyncpa [#allocation9 + $0x1], 1 }

</bundles_post_ra>
